<compile_context>
chip_gen: v5e
topology: v5e:2x2
jax: 0.10.0
libtpu: 0.0.40
codegen_flags: <defaults>
</compile_context>

<pallas_src>
import math
from functools import partial

import jax
import jax.numpy as jnp
from jax.experimental import pallas as pl
from jax.experimental.pallas import tpu as pltpu  # noqa: F401  (TPU backend)

_LANES = 128


def _softplus_plus_eps(b_f32, eps):
    """Overflow-safe, branch-free softplus(b) + eps in f32.

    Reusable inside consumer kernels on a VMEM-resident param ref, e.g.:
        var = _softplus_plus_eps(b_ref[...].astype(jnp.float32), eps)
    """
    return jnp.maximum(b_f32, 0.0) + jnp.log1p(jnp.exp(-jnp.abs(b_f32))) + eps


def _variance_encoder_kernel(b_ref, o_ref, *, eps):
    b = b_ref[...].astype(jnp.float32)          # f32 compute (v5e-safe)
    o_ref[...] = _softplus_plus_eps(b, eps).astype(o_ref.dtype)


def variance_encoder_forward(b, x=None, *, eps=1e-5):
    """Pallas implementation of VarianceEncoder.forward.

    b: the parameter, any shape (typically (1, C, 1, 1) or (1, 1, C)).
    x: ignored (kept for signature parity with the PyTorch module).
    Returns softplus(b) + eps with the same shape/dtype as b.
    """
    orig_shape = b.shape
    c_total = b.size                              # number of parameter scalars
    c_pad = ((c_total + _LANES - 1) // _LANES) * _LANES
    rows = c_pad // _LANES

    b_flat = b.reshape(-1)
    if c_pad != c_total:
        b_flat = jnp.pad(b_flat, (0, c_pad - c_total))
    b2d = b_flat.reshape(rows, _LANES)            # lane-dense slab

    out2d = pl.pallas_call(
        partial(_variance_encoder_kernel, eps=float(eps)),
        out_shape=jax.ShapeDtypeStruct((rows, _LANES), b.dtype),
        in_specs=[pl.BlockSpec((rows, _LANES), lambda: (0, 0))],
        out_specs=pl.BlockSpec((rows, _LANES), lambda: (0, 0)),
        cost_estimate=pl.CostEstimate(
            flops=2 * c_pad,
            transcendentals=2 * c_pad,
            bytes_accessed=2 * c_pad * b.dtype.itemsize,
        ),
    )(b2d)

    return out2d.reshape(-1)[:c_total].reshape(orig_shape)


def init_variance_encoder_param(num_channels, init=0.1, eps=1e-5,
                                hwbc_batch=False, dtype=jnp.float32):
    """Deterministic parameter init matching the PyTorch __init__."""
    # init_val = log(exp(init - eps) - 1)  so that softplus(param) + eps == init
    init_val = math.log(math.exp(init - eps) - 1.0)
    if hwbc_batch:
        b_shape = (1, 1, num_channels)
    else:
        b_shape = (1, num_channels, 1, 1)
    return jnp.full(b_shape, init_val, dtype=dtype)


if __name__ == "__main__":
    key = jax.random.PRNGKey(0)

    batch, num_channels, spatial = 2, 4, 16
    eps = 1e-5

    # x only exists for signature parity; forward ignores it (as in PyTorch).
    x = jax.random.normal(key, (batch, num_channels, spatial, spatial),
                          dtype=jnp.float32)

    # NCHW convention (hwbc_batch=False)
    b = init_variance_encoder_param(num_channels, init=0.1, eps=eps,
                                    hwbc_batch=False)
    out = variance_encoder_forward(b, x, eps=eps)
    out = jax.block_until_ready(out)

    # Reference with the same threshold-safe semantics (jax.nn.softplus).
    ref = jax.nn.softplus(b.astype(jnp.float32)).astype(b.dtype) + eps
    assert out.shape == (1, num_channels, 1, 1)
    assert jnp.allclose(out, ref, atol=1e-6), (out, ref)
    # softplus(log(exp(init - eps) - 1)) + eps should recover init = 0.1
    assert jnp.allclose(out, 0.1, atol=1e-5)

    # HWBC convention (hwbc_batch=True)
    b2 = init_variance_encoder_param(num_channels, init=0.1, eps=eps,
                                     hwbc_batch=True)
    out2 = jax.block_until_ready(variance_encoder_forward(b2, x, eps=eps))
    assert out2.shape == (1, 1, num_channels)
    assert jnp.allclose(out2, 0.1, atol=1e-5)

    # Large-C / non-multiple-of-128 case exercises the padded lane-dense path.
    b3 = init_variance_encoder_param(300, init=0.1, eps=eps, hwbc_batch=False)
    out3 = jax.block_until_ready(variance_encoder_forward(b3, eps=eps))
    assert out3.shape == (1, 300, 1, 1)
    assert jnp.allclose(out3, 0.1, atol=1e-5)

    print("KERNEL_OK")
</pallas_src>

<mosaic_0001>
module attributes {stable_mosaic.version = 11 : i64} {
  func.func @_variance_encoder_kernel(%arg0: memref<1x128xf32, #tpu.memory_space<vmem>>, %arg1: memref<1x128xf32, #tpu.memory_space<vmem>>) attributes {dimension_semantics = [], scalar_prefetch = 0 : i64, scratch_operands = 0 : i64, tpu.core_type = #tpu.core_type<tc>} {
    %c0 = arith.constant 0 : index
    %c0_0 = arith.constant 0 : index
    %0 = vector.load %arg0[%c0, %c0_0] : memref<1x128xf32, #tpu.memory_space<vmem>>, vector<1x128xf32>
    %cst = arith.constant 0.000000e+00 : f32
    %1 = vector.broadcast %cst : f32 to vector<1x128xf32>
    %2 = arith.maximumf %0, %1 : vector<1x128xf32>
    %3 = math.absf %0 : vector<1x128xf32>
    %cst_1 = arith.constant 0.000000e+00 : f32
    %4 = vector.broadcast %cst_1 : f32 to vector<1x128xf32>
    %5 = arith.subf %4, %3 : vector<1x128xf32>
    %6 = math.exp %5 : vector<1x128xf32>
    %7 = math.log1p %6 : vector<1x128xf32>
    %8 = arith.addf %2, %7 : vector<1x128xf32>
    %cst_2 = arith.constant 9.99999974E-6 : f32
    %9 = vector.broadcast %cst_2 : f32 to vector<1x128xf32>
    %10 = arith.addf %8, %9 : vector<1x128xf32>
    %c0_3 = arith.constant 0 : index
    %c0_4 = arith.constant 0 : index
    %11 = vector.load %arg1[%c0_3, %c0_4] : memref<1x128xf32, #tpu.memory_space<vmem>>, vector<1x128xf32>
    tpu.vector_store %arg1[%c0_3, %c0_4], %10 {strides = array<i32>} : memref<1x128xf32, #tpu.memory_space<vmem>>, vector<1x128xf32>,
    return
  }
}

</mosaic_0001>

<bundles_post_ra>
// kernel: tpu_custom_call.1
= control target key start
LH: loop header
LB: loop body
LE: loop exit
PB: predicated region body
PF: predicated region fallthrough
CT: control target
= control target key end

     0   :  { %6 = vsyncpa [#allocation3], 0  ;;  %s134_s0 = inlined_call_operand.hbm [shape: f32[1,128], index: 0, kind: input, shape index: {}]   ;;  %s135_s1 = inlined_call_operand.hbm [shape: f32[1,128], index: 1, kind: output, shape index: {}]  }
   0x1   :  { %7 = vsyncpa [#allocation4], 0  ;;  %s13_s8 = sshll.u32 %s134_s0, 4  ;;  %s116_s9 = smov [#allocation2]   ;;  %s14_s8 = int_to_ptr.hbm [resolvable:$true] %s13_s8 }
   0x2   :  { %s15_s10 = sshll.u32 %s116_s9, 4  ;;  %s16_s10 = int_to_ptr.vmem [resolvable:$true] %s15_s10 }
   0x3   :  { %18 = dma.hbm_to_vmem [thread:$0]  %s14_s8, 16, %s16_s10, [#allocation3]  }
   0x4   :  { %112 = dma.done.wait [#allocation3], 16  }
   0x5   :  { %113 = vsyncadd [#allocation3], 4294967280  ;;  %v23_v0 = vld [vmem:[#allocation2] sm:$0x1]  ;;  %s117_s0 = smov [#allocation5]   ;;  %s48_s14 = sshll.u32 %s135_s1, 4  ;;  %s49_s14 = int_to_ptr.hbm [resolvable:$true] %s48_s14 }
   0x6   :  { %v25_v1 = vand.u32 2147483647, %v23_v0  ;;  %v24_v11 = vmax.f32 %v23_v0, 0.0  ;;  %s46_s11 = sshll.u32 %s117_s0, 4  ;;  %s47_s11 = int_to_ptr.vmem [resolvable:$true] %s46_s11 }
   0x8   :  { %v26_v2 = vsub.f32 0.0, %v25_v1 }
   0xa   :  { %v27_v3 = vmul.f32 1.442695, %v26_v2 }
   0xc   :  { %60 = vpow2.f32 %v27_v3 }
  0x12   :  { %v61_v4 = vpop.eup %60 }
  0x13   :  { %v29_v5 = vadd.f32 1.0, %v61_v4  ;;  %v32_v6 = vmul.f32 -0.5, %v61_v4  ;;  %v35_v8 = vand.u32 2147483647, %v61_v4 }
  0x15   :  { %62 = vlog2.f32 %v29_v5  ;;  %v33_v7 = vadd.f32 1.0, %v32_v6  ;;  %vm36_vm0 = vcmp.lt.f32.partialorder %v35_v8, 0.0004427343 }
  0x17   :  { %v34_v9 = vmul.f32 %v61_v4, %v33_v7 }
  0x1b   :  { %v63_v10 = vpop.eup %62 }
  0x1c   :  { %v31_v12 = vmul.f32 0.6931472, %v63_v10 }
  0x1e   :  { %v37_v13 = vsel %vm36_vm0, %v34_v9, %v31_v12 }
  0x1f   :  { %v38_v14 = vadd.f32 %v37_v13, %v24_v11 }
  0x21   :  { %v39_v15 = vadd.f32 1e-05, %v38_v14 }
  0x23   :  { %40 = vst [vmem:[#allocation5] sm:$0x1] %v39_v15 }
  0x24   :  { %51 = dma.vmem_to_hbm [thread:$0]  %s47_s11, 16, %s49_s14, [#allocation4]  }
  0x25   :  { %114 = dma.done.wait [#allocation4], 16  }
  0x26   :  { %115 = vsyncadd [#allocation4], 4294967280 }
  0x27   :  { %56 = vsyncpa [#allocation3], 1 }
  0x28   :  { %57 = vsyncpa [#allocation4], 1 }

</bundles_post_ra>
